<compile_context>
chip_gen: v5e
topology: v5e:2x2
jax: 0.10.0
libtpu: 0.0.40
codegen_flags: <defaults>
</compile_context>

<pallas_src>
import jax
import jax.numpy as jnp
from jax.experimental import pallas as pl
from jax.experimental.pallas import tpu as pltpu


# ----------------------------------------------------------------------------
# Fused classifier kernel: relu(x @ W1 + b1) @ W2 + b2 -> softmax(dim=1)
# ----------------------------------------------------------------------------
def _classifier_kernel(x_ref, w1_ref, b1_ref, w2_ref, b2_ref, out_ref):
    x = x_ref[...]                                                  # (N, 2*emb)
    h = jnp.dot(x, w1_ref[...], preferred_element_type=jnp.float32) + b1_ref[0]
    h = jnp.maximum(h, 0.0)                                         # ReLU
    logits = jnp.dot(h, w2_ref[...],
                     preferred_element_type=jnp.float32) + b2_ref[0]
    # Numerically stable softmax over dim=1.
    m = jnp.max(logits, axis=-1, keepdims=True)
    e = jnp.exp(logits - m)
    probs = e / jnp.sum(e, axis=-1, keepdims=True)
    out_ref[...] = probs.astype(out_ref.dtype)


def nonlinear_order_classifier(params, emb):
    """Equivalent of NonlinearOrderClassifier.forward.

    emb: any shape (N, ...) whose trailing dims flatten to 2*emb_size.
    returns: (N, 2) softmax probabilities.
    """
    N = emb.shape[0]
    flat = emb.reshape(N, -1).astype(jnp.float32)                   # Flatten()
    out_dim = params["w2"].shape[1]

    return pl.pallas_call(
        _classifier_kernel,
        out_shape=jax.ShapeDtypeStruct((N, out_dim), jnp.float32),
        # Whole (tiny) arrays live in VMEM; no grid / BlockSpec tiling needed.
        compiler_params=pltpu.CompilerParams(
            vmem_limit_bytes=8 * 1024 * 1024),
    )(flat,
      params["w1"], params["b1"].reshape(1, -1),
      params["w2"], params["b2"].reshape(1, -1))


# ----------------------------------------------------------------------------
# Deterministic synthetic parameter init (shapes per module __init__).
# TODO(synk): the PyTorch orthogonal init (init_relu_/init_) only affects
# training dynamics, not forward semantics; plain scaled Gaussians are used.
# ----------------------------------------------------------------------------
def init_params(key, emb_size=256, hidden_size=4, num_classes=2):
    k1, k2 = jax.random.split(key)
    in_dim = 2 * emb_size
    w1 = jax.random.normal(k1, (in_dim, hidden_size), jnp.float32)
    w1 = w1 * (jnp.sqrt(2.0) / jnp.sqrt(float(in_dim)))             # relu gain
    b1 = jnp.zeros((hidden_size,), jnp.float32)
    w2 = jax.random.normal(k2, (hidden_size, num_classes), jnp.float32)
    w2 = w2 * (1.0 / jnp.sqrt(float(hidden_size)))
    b2 = jnp.zeros((num_classes,), jnp.float32)
    return {"w1": w1, "b1": b1, "w2": w2, "b2": b2}


# ----------------------------------------------------------------------------
# Pure-JAX reference for correctness checking.
# ----------------------------------------------------------------------------
def _reference(params, emb):
    N = emb.shape[0]
    x = emb.reshape(N, -1).astype(jnp.float32)
    h = jnp.maximum(x @ params["w1"] + params["b1"], 0.0)
    logits = h @ params["w2"] + params["b2"]
    return jax.nn.softmax(logits, axis=1)


if __name__ == "__main__":
    key = jax.random.PRNGKey(0)
    pkey, xkey = jax.random.split(key)

    # emb_size = 256 (module default) -> Linear(512, 4). batch = 2, the pair of
    # embeddings is given as (N, 2, emb_size) and flattened inside the wrapper.
    EMB_SIZE = 256
    params = init_params(pkey, emb_size=EMB_SIZE, hidden_size=4, num_classes=2)
    emb = jax.random.normal(xkey, (2, 2, EMB_SIZE), jnp.float32)

    fwd = jax.jit(nonlinear_order_classifier)
    probs = jax.block_until_ready(fwd(params, emb))

    ref = _reference(params, emb)

    assert probs.shape == (2, 2)
    assert bool(jnp.all(jnp.isfinite(probs)))
    # Rows are valid probability distributions.
    assert bool(jnp.all(jnp.abs(jnp.sum(probs, axis=1) - 1.0) < 1e-5))
    # Matches the pure-JAX reference.
    assert bool(jnp.all(jnp.abs(probs - ref) < 1e-5))
    print("KERNEL_OK")
</pallas_src>

<mosaic_0001>
module attributes {stable_mosaic.version = 11 : i64} {
  func.func @_classifier_kernel(%arg0: memref<2x512xf32, #tpu.memory_space<vmem>>, %arg1: memref<512x4xf32, #tpu.memory_space<vmem>>, %arg2: memref<1x4xf32, #tpu.memory_space<vmem>>, %arg3: memref<4x2xf32, #tpu.memory_space<vmem>>, %arg4: memref<1x2xf32, #tpu.memory_space<vmem>>, %arg5: memref<2x2xf32, #tpu.memory_space<vmem>>) attributes {dimension_semantics = [], scalar_prefetch = 0 : i64, scratch_operands = 0 : i64, tpu.core_type = #tpu.core_type<tc>} {
    %c0 = arith.constant 0 : index
    %c0_0 = arith.constant 0 : index
    %0 = vector.load %arg0[%c0, %c0_0] : memref<2x512xf32, #tpu.memory_space<vmem>>, vector<2x512xf32>
    %c0_1 = arith.constant 0 : index
    %c0_2 = arith.constant 0 : index
    %1 = vector.load %arg1[%c0_1, %c0_2] : memref<512x4xf32, #tpu.memory_space<vmem>>, vector<512x4xf32>
    %cst = arith.constant dense<0.000000e+00> : vector<2x4xf32>
    %2 = tpu.matmul %0, %1, %cst {dimension_numbers = #tpu.dot_dimension_numbers<[1], [0], [0], [1], [0, 0, 1, 1], [], []>} : vector<2x512xf32>, vector<512x4xf32>, vector<2x4xf32> -> vector<2x4xf32>
    %c0_3 = arith.constant 0 : index
    %c0_4 = arith.constant 0 : index
    %3 = vector.load %arg2[%c0_3, %c0_4] : memref<1x4xf32, #tpu.memory_space<vmem>>, vector<1x4xf32>
    %4 = vector.shape_cast %3 : vector<1x4xf32> to vector<4xf32>
    %5 = vector.shape_cast %4 : vector<4xf32> to vector<1x4xf32>
    %6 = vector.broadcast %5 : vector<1x4xf32> to vector<2x4xf32>
    %7 = arith.addf %2, %6 : vector<2x4xf32>
    %cst_5 = arith.constant 0.000000e+00 : f32
    %8 = vector.broadcast %cst_5 : f32 to vector<2x4xf32>
    %9 = arith.maximumf %7, %8 : vector<2x4xf32>
    %c0_6 = arith.constant 0 : index
    %c0_7 = arith.constant 0 : index
    %10 = vector.load %arg3[%c0_6, %c0_7] : memref<4x2xf32, #tpu.memory_space<vmem>>, vector<4x2xf32>
    %cst_8 = arith.constant dense<0.000000e+00> : vector<2x2xf32>
    %11 = tpu.matmul %9, %10, %cst_8 {dimension_numbers = #tpu.dot_dimension_numbers<[1], [0], [0], [1], [0, 0, 1, 1], [], []>} : vector<2x4xf32>, vector<4x2xf32>, vector<2x2xf32> -> vector<2x2xf32>
    %c0_9 = arith.constant 0 : index
    %c0_10 = arith.constant 0 : index
    %12 = vector.load %arg4[%c0_9, %c0_10] : memref<1x2xf32, #tpu.memory_space<vmem>>, vector<1x2xf32>
    %13 = vector.shape_cast %12 : vector<1x2xf32> to vector<2xf32>
    %14 = vector.shape_cast %13 : vector<2xf32> to vector<1x2xf32>
    %15 = vector.broadcast %14 : vector<1x2xf32> to vector<2x2xf32>
    %16 = arith.addf %11, %15 : vector<2x2xf32>
    %cst_11 = arith.constant dense<0xFF800000> : vector<2xf32>
    %17 = vector.multi_reduction <maximumf>, %16, %cst_11 [1] : vector<2x2xf32> to vector<2xf32>
    %18 = vector.shape_cast %17 : vector<2xf32> to vector<2x1xf32>
    %19 = vector.broadcast %18 : vector<2x1xf32> to vector<2x2xf32>
    %20 = arith.subf %16, %19 : vector<2x2xf32>
    %21 = math.exp %20 : vector<2x2xf32>
    %cst_12 = arith.constant dense<0.000000e+00> : vector<2xf32>
    %22 = vector.multi_reduction <add>, %21, %cst_12 [1] : vector<2x2xf32> to vector<2xf32>
    %23 = vector.shape_cast %22 : vector<2xf32> to vector<2x1xf32>
    %24 = vector.broadcast %23 : vector<2x1xf32> to vector<2x2xf32>
    %25 = arith.divf %21, %24 : vector<2x2xf32>
    %c0_13 = arith.constant 0 : index
    %c0_14 = arith.constant 0 : index
    %26 = vector.load %arg5[%c0_13, %c0_14] : memref<2x2xf32, #tpu.memory_space<vmem>>, vector<2x2xf32>
    tpu.vector_store %arg5[%c0_13, %c0_14], %25 {strides = array<i32>} : memref<2x2xf32, #tpu.memory_space<vmem>>, vector<2x2xf32>,
    return
  }
}

</mosaic_0001>

<bundles_post_ra>
// kernel: nonlinear_order_classifier.1
= control target key start
LH: loop header
LB: loop body
LE: loop exit
PB: predicated region body
PF: predicated region fallthrough
CT: control target
= control target key end

     0   :  { %s532_s0 = inlined_call_operand.vmem [shape: f32[2,512], index: 0, kind: input, shape index: {}]   ;;  %s533_s1 = inlined_call_operand.vmem [shape: f32[512,4], index: 1, kind: input, shape index: {}]   ;;  %s534_s2 = inlined_call_operand.vmem [shape: f32[1,4], index: 2, kind: input, shape index: {}]   ;;  %s535_s3 = inlined_call_operand.vmem [shape: f32[4,2], index: 3, kind: input, shape index: {}]   ;;  %s536_s4 = inlined_call_operand.vmem [shape: f32[1,2], index: 4, kind: input, shape index: {}]   ;;  %s537_s5 = inlined_call_operand.hbm [shape: f32[2,2], index: 5, kind: output, shape index: {}]  }
   0x1   :  { %v69_v0 = vld [vmem:[%s533_s1 + $0x178] sm:$0xff]  ;;  %v68_v2 = vld [vmem:[%s533_s1 + $0x170] sm:$0xff]  ;;  %v67_v6 = vld [vmem:[%s533_s1 + $0x168] sm:$0xff] }
   0x2   :  { %v37_v1 = vld [vmem:[%s533_s1 + $0x78] sm:$0xff]  ;;  %140 = vmatpush.msra.mxu2 %v69_v0  ;;  %v36_v4 = vld [vmem:[%s533_s1 + $0x70] sm:$0xff]  ;;  %v35_v8 = vld [vmem:[%s533_s1 + $0x68] sm:$0xff] }
   0x3   :  { %100 = vmatpush.msra.mxu0 %v37_v1  ;;  %v85_v3 = vld [vmem:[%s533_s1 + $0x1f8] sm:$0xff]  ;;  %v84_v7 = vld [vmem:[%s533_s1 + $0x1f0] sm:$0xff]  ;;  %v83_v10 = vld [vmem:[%s533_s1 + $0x1e8] sm:$0xff] }
   0x4   :  { %v53_v5 = vld [vmem:[%s533_s1 + $0xf8] sm:$0xff]  ;;  %160 = vmatpush.msra.mxu3 %v85_v3  ;;  %141 = vmatpush.msra.mxu2 %v68_v2  ;;  %v52_v9 = vld [vmem:[%s533_s1 + $0xf0] sm:$0xff]  ;;  %v66_v11 = vld [vmem:[%s533_s1 + $0x160] sm:$0xff] }
   0x5   :  { %120 = vmatpush.msra.mxu1 %v53_v5  ;;  %101 = vmatpush.msra.mxu0 %v36_v4  ;;  %v34_v12 = vld [vmem:[%s533_s1 + $0x60] sm:$0xff]  ;;  %v51_v13 = vld [vmem:[%s533_s1 + $0xe8] sm:$0xff]  ;;  %v65_v16 = vld [vmem:[%s533_s1 + $0x158] sm:$0xff] }
   0x6   :  { %161 = vmatpush.msra.mxu3 %v84_v7  ;;  %142 = vmatpush.msra.mxu2 %v67_v6  ;;  %v82_v14 = vld [vmem:[%s533_s1 + $0x1e0] sm:$0xff]  ;;  %v33_v17 = vld [vmem:[%s533_s1 + $0x58] sm:$0xff]  ;;  %v64_v20 = vld [vmem:[%s533_s1 + $0x150] sm:$0xff] }
   0x7   :  { %121 = vmatpush.msra.mxu1 %v52_v9  ;;  %102 = vmatpush.msra.mxu0 %v35_v8  ;;  %v50_v15 = vld [vmem:[%s533_s1 + $0xe0] sm:$0xff]  ;;  %v81_v18 = vld [vmem:[%s533_s1 + $0x1d8] sm:$0xff]  ;;  %v32_v21 = vld [vmem:[%s533_s1 + $0x50] sm:$0xff] }
   0x8   :  { %162 = vmatpush.msra.mxu3 %v83_v10  ;;  %143 = vmatpush.msra.mxu2 %v66_v11  ;;  %v49_v19 = vld [vmem:[%s533_s1 + $0xd8] sm:$0xff]  ;;  %v80_v22 = vld [vmem:[%s533_s1 + $0x1d0] sm:$0xff]  ;;  %v63_v24 = vld [vmem:[%s533_s1 + $0x148] sm:$0xff] }
   0x9   :  { %122 = vmatpush.msra.mxu1 %v51_v13  ;;  %103 = vmatpush.msra.mxu0 %v34_v12  ;;  %v48_v23 = vld [vmem:[%s533_s1 + $0xd0] sm:$0xff]  ;;  %v31_v25 = vld [vmem:[%s533_s1 + $0x48] sm:$0xff]  ;;  %v62_v28 = vld [vmem:[%s533_s1 + $0x140] sm:$0xff] }
   0xa   :  { %163 = vmatpush.msra.mxu3 %v82_v14  ;;  %144 = vmatpush.msra.mxu2 %v65_v16  ;;  %v79_v26 = vld [vmem:[%s533_s1 + $0x1c8] sm:$0xff]  ;;  %v30_v29 = vld [vmem:[%s533_s1 + $0x40] sm:$0xff]  ;;  %v61_v32 = vld [vmem:[%s533_s1 + $0x138] sm:$0xff] }
   0xb   :  { %123 = vmatpush.msra.mxu1 %v50_v15  ;;  %104 = vmatpush.msra.mxu0 %v33_v17  ;;  %v47_v27 = vld [vmem:[%s533_s1 + $0xc8] sm:$0xff]  ;;  %v78_v30 = vld [vmem:[%s533_s1 + $0x1c0] sm:$0xff]  ;;  %v29_v33 = vld [vmem:[%s533_s1 + $0x38] sm:$0xff] }
   0xc   :  { %164 = vmatpush.msra.mxu3 %v81_v18  ;;  %145 = vmatpush.msra.mxu2 %v64_v20  ;;  %v46_v31 = vld [vmem:[%s533_s1 + $0xc0] sm:$0xff]  ;;  %v77_v34 = vld [vmem:[%s533_s1 + $0x1b8] sm:$0xff]  ;;  %v60_v36 = vld [vmem:[%s533_s1 + $0x130] sm:$0xff] }
   0xd   :  { %124 = vmatpush.msra.mxu1 %v49_v19  ;;  %105 = vmatpush.msra.mxu0 %v32_v21  ;;  %v45_v35 = vld [vmem:[%s533_s1 + $0xb8] sm:$0xff]  ;;  %v28_v37 = vld [vmem:[%s533_s1 + $0x30] sm:$0xff]  ;;  %v59_v40 = vld [vmem:[%s533_s1 + $0x128] sm:$0xff] }
   0xe   :  { %165 = vmatpush.msra.mxu3 %v80_v22  ;;  %146 = vmatpush.msra.mxu2 %v63_v24  ;;  %v76_v38 = vld [vmem:[%s533_s1 + $0x1b0] sm:$0xff]  ;;  %v27_v41 = vld [vmem:[%s533_s1 + $0x28] sm:$0xff]  ;;  %v58_v42 = vld [vmem:[%s533_s1 + $0x120] sm:$0xff] }
   0xf   :  { %125 = vmatpush.msra.mxu1 %v48_v23  ;;  %106 = vmatpush.msra.mxu0 %v31_v25  ;;  %v44_v39 = vld [vmem:[%s533_s1 + $0xb0] sm:$0xff]  ;;  %v75_v43 = vld [vmem:[%s533_s1 + $0x1a8] sm:$0xff]  ;;  %v26_v45 = vld [vmem:[%s533_s1 + $0x20] sm:$0xff] }
  0x10   :  { %166 = vmatpush.msra.mxu3 %v79_v26  ;;  %147 = vmatpush.msra.mxu2 %v62_v28  ;;  %v43_v44 = vld [vmem:[%s533_s1 + $0xa8] sm:$0xff]  ;;  %v57_v46 = vld [vmem:[%s533_s1 + $0x118] sm:$0xff]  ;;  %v21_v47 = vld [vmem:[%s532_s0] sm:$0xff] }
  0x11   :  { %126 = vmatpush.msra.mxu1 %v47_v27  ;;  %107 = vmatpush.msra.mxu0 %v30_v29  ;;  %v74_v48 = vld [vmem:[%s533_s1 + $0x1a0] sm:$0xff]  ;;  %91 = vst [vmem:[#allocation1] ss:$4 sm:$0xff] %v21_v47  ;;  %v25_v50 = vld [vmem:[%s533_s1 + $0x18] sm:$0xff] }
  0x12   :  { %167 = vmatpush.msra.mxu3 %v78_v30  ;;  %148 = vmatpush.msra.mxu2 %v61_v32  ;;  %v42_v49 = vld [vmem:[%s533_s1 + $0xa0] sm:$0xff] }
  0x13   :  { %127 = vmatpush.msra.mxu1 %v46_v31  ;;  %108 = vmatpush.msra.mxu0 %v29_v33 }
  0x14   :  { %168 = vmatpush.msra.mxu3 %v77_v34  ;;  %149 = vmatpush.msra.mxu2 %v60_v36 }
  0x15   :  { %128 = vmatpush.msra.mxu1 %v45_v35  ;;  %109 = vmatpush.msra.mxu0 %v28_v37 }
  0x16   :  { %169 = vmatpush.msra.mxu3 %v76_v38  ;;  %150 = vmatpush.msra.mxu2 %v59_v40 }
  0x17   :  { %129 = vmatpush.msra.mxu1 %v44_v39  ;;  %110 = vmatpush.msra.mxu0 %v27_v41 }
  0x18   :  { %170 = vmatpush.msra.mxu3 %v75_v43 }
  0x19   :  { %130 = vmatpush.msra.mxu1 %v43_v44 }
  0x1a   :  { %10 = vsyncpa [#allocation3], 0  ;;  %151 = vmatpush.msra.mxu2 %v58_v42  ;;  %111 = vmatpush.msra.mxu0 %v26_v45  ;;  %v73_v51 = vld [vmem:[%s533_s1 + $0x198] sm:$0xff]  ;;  %v56_v53 = vld [vmem:[%s533_s1 + $0x110] sm:$0xff]  ;;  %vm190_vm0 = vcmask 1043456   ;;  %vm186_vm1 = vcmask 31744  }
  0x1b   :  { %v41_v52 = vld [vmem:[%s533_s1 + $0x98] sm:$0xff]  ;;  %171 = vmatpush.msra.mxu3 %v74_v48  ;;  %131 = vmatpush.msra.mxu1 %v42_v49  ;;  %v24_v54 = vld [vmem:[%s533_s1 + $0x10] sm:$0xff]  ;;  %v55_v57 = vld [vmem:[%s533_s1 + $0x108] sm:$0xff]  ;;  %vm214_vm2 = vcmask 9216   ;;  %s247_s27 = sshll.u32 %s537_s5, 4  ;;  %s248_s27 = int_to_ptr.hbm [resolvable:$true] %s247_s27 }
  0x1c   :  { %152 = vmatpush.msra.mxu2 %v57_v46  ;;  %112 = vmatpush.msra.mxu0 %v25_v50  ;;  %v72_v55 = vld [vmem:[%s533_s1 + $0x190] sm:$0xff]  ;;  %v23_v58 = vld [vmem:[%s533_s1 + $0x8] sm:$0xff]  ;;  %v54_v61 = vld [vmem:[%s533_s1 + $0x100] sm:$0xff] }
  0x1d   :  { %v40_v56 = vld [vmem:[%s533_s1 + $0x90] sm:$0xff]  ;;  %172 = vmatpush.msra.mxu3 %v73_v51  ;;  %132 = vmatpush.msra.mxu1 %v41_v52  ;;  %v71_v59 = vld [vmem:[%s533_s1 + $0x188] sm:$0xff]  ;;  %v22_v62 = vld [vmem:[%s533_s1] sm:$0xff] }
  0x1e   :  { %153 = vmatpush.msra.mxu2 %v56_v53  ;;  %113 = vmatpush.msra.mxu0 %v24_v54  ;;  %v39_v60 = vld [vmem:[%s533_s1 + $0x88] sm:$0xff]  ;;  %v94_v63 = vld.sshfl [vmem:[#allocation1 + $0x10] sm:$0xff pattern:$0x73625140]  ;;  %v70_v0 = vld [vmem:[%s533_s1 + $0x180] sm:$0xff] }
  0x1f   :  { %173 = vmatpush.msra.mxu3 %v72_v55  ;;  %133 = vmatpush.msra.mxu1 %v40_v56  ;;  %v92_v1 = vld.sshfl [vmem:[#allocation1] sm:$0xff pattern:$0x73625140]  ;;  %v95_v2 = vld.sshfl [vmem:[#allocation1 + $0x18] sm:$0xff pattern:$0x73625140] }
  0x20   :  { %154 = vmatpush.msra.mxu2 %v55_v57  ;;  %114 = vmatpush.msra.mxu0 %v23_v58  ;;  %v38_v3 = vld [vmem:[%s533_s1 + $0x80] sm:$0xff]  ;;  %v93_v4 = vld.sshfl [vmem:[#allocation1 + $0x8] sm:$0xff pattern:$0x73625140] }
  0x21   :  { %174 = vmatpush.msra.mxu3 %v71_v59  ;;  %134 = vmatpush.msra.mxu1 %v39_v60  ;;  %v181_v5 = vld [vmem:[%s535_s3] sm:$0xf] }
  0x22   :  { %155 = vmatpush.msra.mxu2 %v54_v61  ;;  %115 = vmatpush.msra.mxu0 %v22_v62  ;;  %v259_v6 = vld [vmem:[%s534_s2] ss:$0 sm:$0xff]  ;;  %s291_s2 = smov [#allocation2]  }
  0x23   :  { %156 = vmatmul.f32.vlgmr.msra.gmra.mxu2 %v94_v63  ;;  %175 = vmatpush.msra.mxu3 %v70_v0  ;;  %v260_v16 = vld [vmem:[%s536_s4] ss:$0 sm:$0xff]  ;;  %s245_s3 = sshll.u32 %s291_s2, 4  ;;  %s246_s3 = int_to_ptr.vmem [resolvable:$true] %s245_s3 }
  0x24   :  { %116 = vmatmul.f32.vlgmr.msra.gmra.mxu0 %v92_v1  ;;  %176 = vmatmul.f32.vlgmr.msra.gmra.mxu3 %v95_v2 }
  0x25   :  { %135 = vmatpush.msra.mxu1 %v38_v3  ;;  %256 = vmatpush.msk.msrb.mxu0 %vm190_vm0, %v181_v5 }
  0x26   :  { %136 = vmatmul.f32.vlgmr.msra.gmra.mxu1 %v93_v4 }
  0xa1   :  { %v117_v7 = vpop.f32.mrf.mxu0 }
  0xa2   :  { %v118_v8 = vadd.f32 %v259_v6, %v117_v7 }
  0xa3   :  { %v137_v9 = vpop.f32.mrf.mxu1 }
  0xa4   :  { %v138_v10 = vadd.f32 %v137_v9, %v118_v8 }
  0xa6   :  { %v157_v11 = vpop.f32.mrf.mxu2 }
  0xa7   :  { %v158_v12 = vadd.f32 %v157_v11, %v138_v10  ;;  %v177_v13 = vpop.f32.mrf.mxu3 }
  0xa9   :  { %v178_v14 = vadd.f32 %v177_v13, %v158_v12 }
  0xab   :  { %v180_v15 = vmax.f32 %v178_v14, 0.0 }
  0xad   :  { %257 = vmatmul.msk.f32.vlgmr.msrb.gmra.mxu0 %vm186_vm1, %v180_v15 }
 0x12a   :  { %v211_v17 = vpop.f32.mrf.mxu0 }
 0x12b   :  { %v212_v18 = vadd.f32 %v260_v16, %v211_v17 }
 0x12d   :  { %v215_v19 = vsel %vm214_vm2, %v212_v18, -inf }
 0x12e   :  { %216 = vmax.xlane.f32.xlu0 %v215_v19 }
 0x1a1   :  { %v217_v20 = vpop.xlane.xlu0 %216 }
 0x1a2   :  { %v218_v21 = vsub.f32 %v212_v18, %v217_v20 }
 0x1a4   :  { %v219_v22 = vmul.f32 1.442695, %v218_v21 }
 0x1a6   :  { %261 = vpow2.f32 %v219_v22 }
 0x1ac   :  { %v262_v23 = vpop.eup %261 }
 0x1ad   :  { %v221_v24 = vsel %vm214_vm2, %v262_v23, 0.0 }
 0x1ae   :  { %222 = vadd.xlane.f32.xlu0 %v221_v24 }
 0x221   :  { %v223_v25 = vpop.xlane.xlu0 %222 }
 0x222   :  { %263 = vrcp.f32 %v223_v25  ;;  %v235_v29 = vand.u32 2147483648, %v223_v25  ;;  %v233_v31 = vand.u32 2147483647, %v223_v25  ;;  %vm229_vm4 = vweird.f32 %v223_v25 }
 0x224   :  { %v236_v33 = vor.u32 1.1754944e-38, %v235_v29  ;;  %vm234_vm6 = vcmp.eq.f32.partialorder %v233_v31, 8.507059e+37 }
 0x228   :  { %v264_v26 = vpop.eup %263 }
 0x229   :  { %v225_v27 = vmul.f32 %v264_v26, %v223_v25  ;;  %vm230_vm3 = vweird.f32 %v264_v26 }
 0x22a   :  { %vm231_vm5 = vmor %vm229_vm4, %vm230_vm3 }
 0x22b   :  { %v226_v28 = vsub.f32 1.0, %v225_v27 }
 0x22d   :  { %v227_v30 = vmul.f32 %v264_v26, %v226_v28 }
 0x22f   :  { %v228_v32 = vadd.f32 %v264_v26, %v227_v30 }
 0x231   :  { %v232_v34 = vsel %vm231_vm5, %v264_v26, %v228_v32 }
 0x232   :  { %v237_v35 = vsel %vm234_vm6, %v236_v33, %v232_v34 }
 0x233   :  { %v238_v36 = vmul.f32 %v262_v23, %v237_v35 }
 0x235   :  { %239 = vst.msk [vmem:[#allocation2] sm:$0x3] %vm214_vm2, %v238_v36 }
 0x236   :  { %250 = dma.vmem_to_hbm [thread:$0]  %s246_s3, 32, %s248_s27, [#allocation3]  }
 0x237   :  { %289 = dma.done.wait [#allocation3], 32  }
 0x238   :  { %290 = vsyncadd [#allocation3], 4294967264 }
 0x239   :  { %255 = vsyncpa [#allocation3], 1 }

</bundles_post_ra>
